<compile_context>
chip_gen: v5e
topology: v5e:2x2
jax: 0.10.0
libtpu: 0.0.40
codegen_flags: <defaults>
</compile_context>

<pallas_src>
import functools
import math

import jax
import jax.numpy as jnp
from jax import lax
from jax.experimental import pallas as pl
from jax.experimental.pallas import tpu as pltpu

# ----------------------------- model config (scaled-down deberta-large) ---------------------
VOCAB = 64
HIDDEN = 32
NUM_HEADS = 4
HEAD_DIM = HIDDEN // NUM_HEADS
NUM_LAYERS = 2
INTERMEDIATE = 64
MAX_REL_POS = 8            # "max_relative_positions" (k); rel embedding table has 2k rows
TYPE_VOCAB = 2             # NOTE: real deberta-large has type_vocab_size=0; we honor `segment`
LN_EPS = 1e-7
CLS_POOL = False           # TODO(synk): `param.cls` is an external global in the reference;
                           # we implement the mean-pool branch (param.cls == False).

MXU_DTYPE = jnp.bfloat16   # bf16 at the pallas_call / MXU boundary; accumulate in f32


def _default_vmem_limit():
    """Scoped VMEM limit: ~3/4 of physical (96 MiB on v5e/v6e, ~48 MiB on v7x)."""
    try:
        cap = pltpu.get_tpu_info().vmem_capacity_bytes
    except Exception:
        cap = 64 * 1024 * 1024
    return int(min(cap * 3 // 4, 96 * 1024 * 1024))


VMEM_LIMIT = _default_vmem_limit()


def _pick_tile(dim, pref, align):
    """Largest `align`-aligned divisor of `dim` that is <= `pref` (full dim if dim <= pref)."""
    if dim <= pref:
        return dim
    t = (pref // align) * align
    while t >= align:
        if dim % t == 0:
            return t
        t -= align
    # TODO(synk): no aligned divisor -> full dim; a cdiv grid with a masked remainder
    # block would bound VMEM for truly awkward shapes.
    return dim


# ----------------------------- tiled dense (+optional GELU epilogue) ------------------------
def _dense_kernel(x_ref, w_ref, b_ref, o_ref, acc_ref, *, activation):
    @pl.when(pl.program_id(2) == 0)
    def _init():
        acc_ref[...] = jnp.zeros_like(acc_ref)

    acc_ref[...] += jnp.dot(x_ref[...], w_ref[...], preferred_element_type=jnp.float32)

    @pl.when(pl.program_id(2) == pl.num_programs(2) - 1)
    def _finalize():
        y = acc_ref[...] + b_ref[...].astype(jnp.float32)
        if activation == "gelu":
            # TODO(synk): HF DeBERTa uses exact erf-GELU; tanh approximation (EUP path) here.
            y = jax.nn.gelu(y, approximate=True)
        o_ref[...] = y.astype(o_ref.dtype)


def dense(x, w, b, activation=None, out_dtype=MXU_DTYPE,
          tm_pref=256, tn_pref=256, tk_pref=512):
    """x:(M,K) @ w:(K,N) + b, tiled/pipelined, bf16 MXU inputs, f32 accumulation."""
    M, K = x.shape
    N = w.shape[1]
    tm = _pick_tile(M, tm_pref, 8)
    tn = _pick_tile(N, tn_pref, 128)
    tk = _pick_tile(K, tk_pref, 128)
    grid = (M // tm, N // tn, K // tk)
    return pl.pallas_call(
        functools.partial(_dense_kernel, activation=activation),
        out_shape=jax.ShapeDtypeStruct((M, N), out_dtype),
        grid=grid,
        in_specs=[
            pl.BlockSpec((tm, tk), lambda i, j, k: (i, k)),
            pl.BlockSpec((tk, tn), lambda i, j, k: (k, j)),
            pl.BlockSpec((1, tn), lambda i, j, k: (0, j)),
        ],
        out_specs=pl.BlockSpec((tm, tn), lambda i, j, k: (i, j)),
        scratch_shapes=[pltpu.VMEM((tm, tn), jnp.float32)],
        compiler_params=pltpu.CompilerParams(
            dimension_semantics=("parallel", "parallel", "arbitrary"),
            vmem_limit_bytes=VMEM_LIMIT),
    )(x.astype(MXU_DTYPE), w.astype(MXU_DTYPE), b.reshape(1, N).astype(jnp.float32))


# ----------------------------- tiled dense + residual + LayerNorm (fused epilogue) ----------
def _dense_ln_kernel(x_ref, w_ref, b_ref, r_ref, g_ref, be_ref, o_ref, acc_ref, *, eps):
    @pl.when(pl.program_id(1) == 0)
    def _init():
        acc_ref[...] = jnp.zeros_like(acc_ref)

    acc_ref[...] += jnp.dot(x_ref[...], w_ref[...], preferred_element_type=jnp.float32)

    @pl.when(pl.program_id(1) == pl.num_programs(1) - 1)
    def _finalize():
        y = acc_ref[...] + b_ref[...].astype(jnp.float32) + r_ref[...].astype(jnp.float32)
        mu = jnp.mean(y, axis=-1, keepdims=True)
        var = jnp.mean(jnp.square(y - mu), axis=-1, keepdims=True)
        y = (y - mu) * lax.rsqrt(var + eps)
        o_ref[...] = (y * g_ref[...].astype(jnp.float32)
                      + be_ref[...].astype(jnp.float32)).astype(o_ref.dtype)


def dense_ln(x, w, b, residual, gamma, beta, eps=LN_EPS, out_dtype=MXU_DTYPE,
             tm_pref=256, tk_pref=512):
    """LayerNorm(x @ w + b + residual) with the LN fused into the matmul epilogue.
    N (hidden) stays un-tiled so the LN sees the full feature axis."""
    M, K = x.shape
    N = w.shape[1]
    tm = _pick_tile(M, tm_pref, 8)
    tk = _pick_tile(K, tk_pref, 128)
    grid = (M // tm, K // tk)
    return pl.pallas_call(
        functools.partial(_dense_ln_kernel, eps=eps),
        out_shape=jax.ShapeDtypeStruct((M, N), out_dtype),
        grid=grid,
        in_specs=[
            pl.BlockSpec((tm, tk), lambda i, k: (i, k)),
            pl.BlockSpec((tk, N), lambda i, k: (k, 0)),
            pl.BlockSpec((1, N), lambda i, k: (0, 0)),
            pl.BlockSpec((tm, N), lambda i, k: (i, 0)),
            pl.BlockSpec((1, N), lambda i, k: (0, 0)),
            pl.BlockSpec((1, N), lambda i, k: (0, 0)),
        ],
        out_specs=pl.BlockSpec((tm, N), lambda i, k: (i, 0)),
        scratch_shapes=[pltpu.VMEM((tm, N), jnp.float32)],
        compiler_params=pltpu.CompilerParams(
            dimension_semantics=("parallel", "arbitrary"),
            vmem_limit_bytes=VMEM_LIMIT),
    )(x.astype(MXU_DTYPE), w.astype(MXU_DTYPE), b.reshape(1, N).astype(jnp.float32),
      residual, gamma.reshape(1, N).astype(jnp.float32), beta.reshape(1, N).astype(jnp.float32))


# ----------------------------- embedding LayerNorm (+ embedding-mask fold) ------------------
def _emb_ln_kernel(x_ref, g_ref, b_ref, m_ref, o_ref, *, eps):
    x = x_ref[...].astype(jnp.float32)
    mu = jnp.mean(x, axis=-1, keepdims=True)
    var = jnp.mean(jnp.square(x - mu), axis=-1, keepdims=True)
    y = (x - mu) * lax.rsqrt(var + eps)
    y = y * g_ref[...] + b_ref[...]
    o_ref[...] = (y * m_ref[...]).astype(o_ref.dtype)     # DeBERTa masks embeddings


def embedding_layer_norm(x, gamma, beta, mask_rows, eps=LN_EPS, out_dtype=MXU_DTYPE):
    M, H = x.shape
    tm = _pick_tile(M, 256, 8)
    grid = (M // tm,)
    return pl.pallas_call(
        functools.partial(_emb_ln_kernel, eps=eps),
        out_shape=jax.ShapeDtypeStruct((M, H), out_dtype),
        grid=grid,
        in_specs=[
            pl.BlockSpec((tm, H), lambda i: (i, 0)),
            pl.BlockSpec((1, H), lambda i: (0, 0)),
            pl.BlockSpec((1, H), lambda i: (0, 0)),
            pl.BlockSpec((tm, 1), lambda i: (i, 0)),
        ],
        out_specs=pl.BlockSpec((tm, H), lambda i: (i, 0)),
        compiler_params=pltpu.CompilerParams(
            dimension_semantics=("parallel",),
            vmem_limit_bytes=VMEM_LIMIT),
    )(x.astype(jnp.float32), gamma.reshape(1, H).astype(jnp.float32),
      beta.reshape(1, H).astype(jnp.float32), mask_rows.reshape(M, 1).astype(jnp.float32))


# ----------------------------- disentangled attention ---------------------------------------
def _attn_kernel(q_ref, k_ref, v_ref, pk_ref, pq_ref, m_ref, o_ref, *, span):
    # Blocks: q/k/v (1,1,S,d); pos_k/pos_q (1,R,d); mask (1,1,S); out (1,1,S,d).
    q = q_ref[0, 0]                               # (S, d) bf16
    k = k_ref[0, 0]
    v = v_ref[0, 0]
    pk = pk_ref[0]                                # (R, d) bf16
    pq = pq_ref[0]
    mk = m_ref[0].astype(jnp.float32)             # (1, S)
    S, d = q.shape
    R = 2 * span
    scale = 1.0 / math.sqrt(d * 3.0)              # scale_factor = 1 + |{c2p, p2c}| = 3

    nt = (((1,), (1,)), ((), ()))                 # A @ B.T on the MXU

    # Fused c2c + c2p matmul: q @ [k ; pos_k].T -> (S, S+R) in one MXU call.
    kcat = jnp.concatenate([k, pk], axis=0)       # (S+R, d)
    s_all = lax.dot_general(q, kcat, nt, preferred_element_type=jnp.float32)   # (S, S+R)
    c2c = s_all[:, :S]
    c2p_all = s_all[:, S:]                        # (S, R)
    p2c_all = lax.dot_general(k, pq, nt, preferred_element_type=jnp.float32)   # (S, R)

    # Relative index generated in-kernel: rel[i,j] = clamp(i - j + span, 0, R-1).
    ii = lax.broadcasted_iota(jnp.int32, (S, S), 0)
    jj = lax.broadcasted_iota(jnp.int32, (S, S), 1)
    rel = jnp.clip(ii - jj + span, 0, R - 1)
    rr = lax.broadcasted_iota(jnp.int32, (S, S, R), 2)
    sel = (rel[:, :, None] == rr).astype(jnp.float32)        # one-hot, shared by both gathers
    # TODO(synk): at production S/R replace this O(S^2*R) select with the strided
    # pltpu.roll skew trick (XLU) + key-block tiling (flash-style online softmax).
    c2p = jnp.sum(sel * c2p_all[:, None, :], axis=-1)        # c2p[i,j] = c2p_all[i, rel[i,j]]
    p2c = jnp.sum(sel * p2c_all[None, :, :], axis=-1)        # p2c[i,j] = p2c_all[j, rel[i,j]]

    # 2-D mask built in-kernel from the 1-D per-batch mask row.
    m2 = jnp.transpose(mk) * mk                               # (S, S)
    scores = (c2c + c2p + p2c) * scale + (1.0 - m2) * (-1e9)
    mx = jnp.max(scores, axis=-1, keepdims=True)
    e = jnp.exp(scores - mx)
    denom = jnp.sum(e, axis=-1, keepdims=True)
    probs = (e * pl.reciprocal(denom, approx=True)) * m2      # XSoftmax: zero masked entries

    ctx = jnp.dot(probs.astype(v.dtype), v, preferred_element_type=jnp.float32)  # (S, d)
    o_ref[0, 0] = ctx.astype(o_ref.dtype)


def disentangled_attention(q, k, v, pos_k, pos_q, mask3, span):
    """q/k/v: (B, nh, S, d); pos_k/pos_q: (nh, R, d); mask3: (B, 1, S) -> ctx (B, nh, S, d)."""
    B, nh, S, d = q.shape
    R = 2 * span
    return pl.pallas_call(
        functools.partial(_attn_kernel, span=span),
        out_shape=jax.ShapeDtypeStruct((B, nh, S, d), MXU_DTYPE),
        grid=(B, nh),
        in_specs=[
            pl.BlockSpec((1, 1, S, d), lambda b, h: (b, h, 0, 0)),
            pl.BlockSpec((1, 1, S, d), lambda b, h: (b, h, 0, 0)),
            pl.BlockSpec((1, 1, S, d), lambda b, h: (b, h, 0, 0)),
            pl.BlockSpec((1, R, d), lambda b, h: (h, 0, 0)),
            pl.BlockSpec((1, R, d), lambda b, h: (h, 0, 0)),
            pl.BlockSpec((1, 1, S), lambda b, h: (b, 0, 0)),
        ],
        out_specs=pl.BlockSpec((1, 1, S, d), lambda b, h: (b, h, 0, 0)),
        compiler_params=pltpu.CompilerParams(
            dimension_semantics=("parallel", "parallel"),
            vmem_limit_bytes=VMEM_LIMIT),
    )(q.astype(MXU_DTYPE), k.astype(MXU_DTYPE), v.astype(MXU_DTYPE),
      pos_k.astype(MXU_DTYPE), pos_q.astype(MXU_DTYPE), mask3.astype(jnp.float32))


# ----------------------------- mean pool -----------------------------------------------------
def _mean_pool_kernel(x_ref, o_ref):
    x = x_ref[0].astype(jnp.float32)              # (S, H)
    # Reference divides by the static sequence length (outputs[0].shape[1]), not the mask sum.
    o_ref[0] = (jnp.sum(x, axis=0, keepdims=True) * (1.0 / x.shape[0])).astype(o_ref.dtype)


def mean_pool(hidden):
    B, S, H = hidden.shape
    out = pl.pallas_call(
        _mean_pool_kernel,
        out_shape=jax.ShapeDtypeStruct((B, 1, H), jnp.float32),
        grid=(B,),
        in_specs=[pl.BlockSpec((1, S, H), lambda b: (b, 0, 0))],
        out_specs=pl.BlockSpec((1, 1, H), lambda b: (b, 0, 0)),
        compiler_params=pltpu.CompilerParams(
            dimension_semantics=("parallel",),
            vmem_limit_bytes=VMEM_LIMIT),
    )(hidden)
    return out.reshape(B, H)


# ----------------------------- parameters ----------------------------------------------------
def init_params(key):
    std = 0.02
    keys = jax.random.split(key, 4 + NUM_LAYERS * 9)
    nk = iter(list(keys))

    def w(shape):
        return (std * jax.random.normal(next(nk), shape)).astype(jnp.float32)

    params = {
        "word_emb": w((VOCAB, HIDDEN)),
        "tok_type_emb": w((TYPE_VOCAB, HIDDEN)),
        "rel_emb": w((2 * MAX_REL_POS, HIDDEN)),            # shared across layers
        "emb_ln_g": jnp.ones((HIDDEN,), jnp.float32),
        "emb_ln_b": jnp.zeros((HIDDEN,), jnp.float32),
        "layers": [],
    }
    _ = next(nk)  # keep split count deterministic/stable
    for _l in range(NUM_LAYERS):
        wq, wk, wv = w((HIDDEN, HIDDEN)), w((HIDDEN, HIDDEN)), w((HIDDEN, HIDDEN))
        wpk, wpq = w((HIDDEN, HIDDEN)), w((HIDDEN, HIDDEN))
        layer = {
            # weights stored in bf16 once (halves HBM weight traffic, no per-call convert)
            "w_qkv": jnp.concatenate([wq, wk, wv], axis=1).astype(MXU_DTYPE),
            "b_qkv": jnp.zeros((3 * HIDDEN,), jnp.float32),
            "w_pos": jnp.concatenate([wpk, wpq], axis=1).astype(MXU_DTYPE),
            "b_pos": jnp.zeros((2 * HIDDEN,), jnp.float32),
            "wo": w((HIDDEN, HIDDEN)).astype(MXU_DTYPE), "bo": jnp.zeros((HIDDEN,), jnp.float32),
            "attn_ln_g": jnp.ones((HIDDEN,), jnp.float32),
            "attn_ln_b": jnp.zeros((HIDDEN,), jnp.float32),
            "wi": w((HIDDEN, INTERMEDIATE)).astype(MXU_DTYPE),
            "bi": jnp.zeros((INTERMEDIATE,), jnp.float32),
            "wf": w((INTERMEDIATE, HIDDEN)).astype(MXU_DTYPE),
            "bf": jnp.zeros((HIDDEN,), jnp.float32),
            "out_ln_g": jnp.ones((HIDDEN,), jnp.float32),
            "out_ln_b": jnp.zeros((HIDDEN,), jnp.float32),
        }
        params["layers"].append(layer)
    return params


# ----------------------------- forward pass ---------------------------------------------------
def deberta_encoder_forward(params, input_ids, mask=None, segment=None):
    B, S = input_ids.shape
    H, nh, d = HIDDEN, NUM_HEADS, HEAD_DIM
    if mask is None:
        mask = jnp.ones((B, S), jnp.float32)
    mask = mask.astype(jnp.float32)

    # ---- embeddings (gather = JAX glue); LayerNorm + embedding-mask fused in one kernel ----
    emb = params["word_emb"][input_ids]                     # (B, S, H)
    if segment is not None:
        emb = emb + params["tok_type_emb"][segment]
    h = embedding_layer_norm(emb.reshape(B * S, H),
                             params["emb_ln_g"], params["emb_ln_b"],
                             mask.reshape(B * S))           # (B*S, H) bf16

    att_span = min(S, MAX_REL_POS)
    R = 2 * att_span
    rel_emb = params["rel_emb"][MAX_REL_POS - att_span:MAX_REL_POS + att_span]  # (R, H)
    mask3 = mask.reshape(B, 1, S)                           # 1-D per-batch mask row

    for layer in params["layers"]:
        # fused Q|K|V projection: one MXU pass over h; reshape to head-major for BlockSpecs
        qkv = dense(h, layer["w_qkv"], layer["b_qkv"])                        # (B*S, 3H)
        qkv = qkv.reshape(B, S, 3, nh, d).transpose(2, 0, 3, 1, 4)            # (3, B, nh, S, d)
        q, k, v = qkv[0], qkv[1], qkv[2]

        # fused relative-position projections on the tiny (R, H) table
        pos_kq = dense(rel_emb, layer["w_pos"], layer["b_pos"])               # (R, 2H)
        pos_kq = pos_kq.reshape(R, 2, nh, d).transpose(1, 2, 0, 3)            # (2, nh, R, d)
        pos_k, pos_q = pos_kq[0], pos_kq[1]

        # disentangled attention: grid over (batch, head), rel/mask built in-kernel
        ctx = disentangled_attention(q, k, v, pos_k, pos_q, mask3, att_span)  # (B, nh, S, d)
        ctx = ctx.transpose(0, 2, 1, 3).reshape(B * S, H)

        # attention output projection + residual + LayerNorm (fused epilogue)
        h = dense_ln(ctx, layer["wo"], layer["bo"], h,
                     layer["attn_ln_g"], layer["attn_ln_b"])

        # feed-forward: GELU fused into the first matmul, residual+LN fused into the second
        ff = dense(h, layer["wi"], layer["bi"], activation="gelu")
        h = dense_ln(ff, layer["wf"], layer["bf"], h,
                     layer["out_ln_g"], layer["out_ln_b"])

    hidden = h.reshape(B, S, H)                             # last_hidden_state (bf16)

    if CLS_POOL:
        feat = hidden[:, 0, :].astype(jnp.float32)
    else:
        feat = mean_pool(hidden)                            # sum over seq / S (matches reference)
    return feat


# ----------------------------- main ------------------------------------------------------------
if __name__ == "__main__":
    key = jax.random.PRNGKey(0)
    kp, kid, kseg = jax.random.split(key, 3)

    B, S = 2, 8
    params = init_params(kp)
    input_ids = jax.random.randint(kid, (B, S), 0, VOCAB, dtype=jnp.int32)
    mask = jnp.ones((B, S), jnp.float32)
    segment = jax.random.randint(kseg, (B, S), 0, TYPE_VOCAB, dtype=jnp.int32)

    feat = deberta_encoder_forward(params, input_ids, mask, segment)
    feat = jax.block_until_ready(feat)
    assert feat.shape == (B, HIDDEN), feat.shape
    assert jnp.all(jnp.isfinite(feat))
    print("KERNEL_OK")
</pallas_src>

<mosaic_0001>
module attributes {stable_mosaic.version = 11 : i64} {
  func.func @_emb_ln_kernel(%arg0: i32, %arg1: memref<16x32xf32, #tpu.memory_space<vmem>>, %arg2: memref<1x32xf32, #tpu.memory_space<vmem>>, %arg3: memref<1x32xf32, #tpu.memory_space<vmem>>, %arg4: memref<16x1xf32, #tpu.memory_space<vmem>>, %arg5: memref<16x32xbf16, #tpu.memory_space<vmem>>) attributes {dimension_semantics = [#tpu.dimension_semantics<parallel>], iteration_bounds = array<i64: 1>, scalar_prefetch = 0 : i64, scratch_operands = 0 : i64, tpu.core_type = #tpu.core_type<tc>, window_params = [{transform_indices = @transform_0, window_bounds = array<i64: 16, 32>}, {pipeline_mode = #tpu.pipeline_mode<synchronous>, transform_indices = @transform_1, window_bounds = array<i64: 1, 32>}, {pipeline_mode = #tpu.pipeline_mode<synchronous>, transform_indices = @transform_2, window_bounds = array<i64: 1, 32>}, {transform_indices = @transform_3, window_bounds = array<i64: 16, 1>}, {transform_indices = @transform_4, window_bounds = array<i64: 16, 32>}]} {
    %c0 = arith.constant 0 : index
    %c0_0 = arith.constant 0 : index
    %0 = vector.load %arg1[%c0, %c0_0] : memref<16x32xf32, #tpu.memory_space<vmem>>, vector<16x32xf32>
    %cst = arith.constant dense<0.000000e+00> : vector<16xf32>
    %1 = vector.multi_reduction <add>, %0, %cst [1] : vector<16x32xf32> to vector<16xf32>
    %2 = vector.shape_cast %1 : vector<16xf32> to vector<16x1xf32>
    %cst_1 = arith.constant 3.200000e+01 : f32
    %3 = vector.broadcast %cst_1 : f32 to vector<16x1xf32>
    %4 = arith.divf %2, %3 : vector<16x1xf32>
    %5 = vector.broadcast %4 : vector<16x1xf32> to vector<16x32xf32>
    %6 = arith.subf %0, %5 : vector<16x32xf32>
    %7 = arith.mulf %6, %6 : vector<16x32xf32>
    %cst_2 = arith.constant dense<0.000000e+00> : vector<16xf32>
    %8 = vector.multi_reduction <add>, %7, %cst_2 [1] : vector<16x32xf32> to vector<16xf32>
    %9 = vector.shape_cast %8 : vector<16xf32> to vector<16x1xf32>
    %cst_3 = arith.constant 3.200000e+01 : f32
    %10 = vector.broadcast %cst_3 : f32 to vector<16x1xf32>
    %11 = arith.divf %9, %10 : vector<16x1xf32>
    %12 = vector.broadcast %4 : vector<16x1xf32> to vector<16x32xf32>
    %13 = arith.subf %0, %12 : vector<16x32xf32>
    %cst_4 = arith.constant 1.000000e-07 : f32
    %14 = vector.broadcast %cst_4 : f32 to vector<16x1xf32>
    %15 = arith.addf %11, %14 : vector<16x1xf32>
    %16 = math.rsqrt %15 : vector<16x1xf32>
    %17 = vector.broadcast %16 : vector<16x1xf32> to vector<16x32xf32>
    %18 = arith.mulf %13, %17 : vector<16x32xf32>
    %c0_5 = arith.constant 0 : index
    %c0_6 = arith.constant 0 : index
    %19 = vector.load %arg2[%c0_5, %c0_6] : memref<1x32xf32, #tpu.memory_space<vmem>>, vector<1x32xf32>
    %20 = vector.broadcast %19 : vector<1x32xf32> to vector<16x32xf32>
    %21 = arith.mulf %18, %20 : vector<16x32xf32>
    %c0_7 = arith.constant 0 : index
    %c0_8 = arith.constant 0 : index
    %22 = vector.load %arg3[%c0_7, %c0_8] : memref<1x32xf32, #tpu.memory_space<vmem>>, vector<1x32xf32>
    %23 = vector.broadcast %22 : vector<1x32xf32> to vector<16x32xf32>
    %24 = arith.addf %21, %23 : vector<16x32xf32>
    %c0_9 = arith.constant 0 : index
    %c0_10 = arith.constant 0 : index
    %25 = vector.load %arg4[%c0_9, %c0_10] : memref<16x1xf32, #tpu.memory_space<vmem>>, vector<16x1xf32>
    %26 = vector.broadcast %25 : vector<16x1xf32> to vector<16x32xf32>
    %27 = arith.mulf %24, %26 : vector<16x32xf32>
    %28 = arith.truncf %27 : vector<16x32xf32> to vector<16x32xbf16>
    %c0_11 = arith.constant 0 : index
    %c0_12 = arith.constant 0 : index
    %29 = vector.load %arg5[%c0_11, %c0_12] : memref<16x32xbf16, #tpu.memory_space<vmem>>, vector<16x32xbf16>
    tpu.vector_store %arg5[%c0_11, %c0_12], %28 {strides = array<i32>} : memref<16x32xbf16, #tpu.memory_space<vmem>>, vector<16x32xbf16>,
    return
  }
  func.func @transform_0(%arg0: i32) -> (i32, i32) {
    %c0_i32 = arith.constant 0 : i32
    %c0_i32_0 = arith.constant 0 : i32
    return %arg0, %c0_i32 : i32, i32
  }
  func.func @transform_1(%arg0: i32) -> (i32, i32) {
    %c0_i32 = arith.constant 0 : i32
    %c0_i32_0 = arith.constant 0 : i32
    %c0_i32_1 = arith.constant 0 : i32
    return %c0_i32, %c0_i32_0 : i32, i32
  }
  func.func @transform_2(%arg0: i32) -> (i32, i32) {
    %c0_i32 = arith.constant 0 : i32
    %c0_i32_0 = arith.constant 0 : i32
    %c0_i32_1 = arith.constant 0 : i32
    return %c0_i32, %c0_i32_0 : i32, i32
  }
  func.func @transform_3(%arg0: i32) -> (i32, i32) {
    %c0_i32 = arith.constant 0 : i32
    %c0_i32_0 = arith.constant 0 : i32
    return %arg0, %c0_i32 : i32, i32
  }
  func.func @transform_4(%arg0: i32) -> (i32, i32) {
    %c0_i32 = arith.constant 0 : i32
    %c0_i32_0 = arith.constant 0 : i32
    return %arg0, %c0_i32 : i32, i32
  }
}

</mosaic_0001>

<bundles_post_ra>
// kernel: tpu_custom_call.1
= control target key start
LH: loop header
LB: loop body
LE: loop exit
PB: predicated region body
PF: predicated region fallthrough
CT: control target
= control target key end

     0   :  { %9 = vsyncpa [#allocation3], 0  ;;  %s260_s0 = inlined_call_operand.vmem [shape: f32[16,32], index: 0, kind: input, shape index: {}]   ;;  %s261_s1 = inlined_call_operand.vmem [shape: f32[1,32], index: 1, kind: input, shape index: {}]   ;;  %s262_s2 = inlined_call_operand.hbm [shape: f32[1,32], index: 2, kind: input, shape index: {}]   ;;  %s263_s3 = inlined_call_operand.vmem [shape: f32[16,1], index: 3, kind: input, shape index: {}]   ;;  %s264_s4 = inlined_call_operand.hbm [shape: bf16[16,32], index: 4, kind: output, shape index: {}]  }
   0x1   :  { %10 = vsyncpa [#allocation4], 0  ;;  %s20_s17 = sshll.u32 %s262_s2, 4  ;;  %s204_s18 = smov [#allocation2]   ;;  %s21_s17 = int_to_ptr.hbm [resolvable:$true] %s20_s17 }
   0x2   :  { %s22_s19 = sshll.u32 %s204_s18, 4  ;;  %s23_s19 = int_to_ptr.vmem [resolvable:$true] %s22_s19 }
   0x3   :  { %25 = dma.hbm_to_vmem [thread:$0]  %s21_s17, 16, %s23_s19, [#allocation3]  }
   0x4   :  { %200 = dma.done.wait [#allocation3], 16  }
   0x5   :  { %201 = vsyncadd [#allocation3], 4294967280  ;;  %vm34_vm0 = vcmask 261120   ;;  %v32_v0 = vld [vmem:[%s260_s0] sm:$0xff]  ;;  %v33_v2 = vld [vmem:[%s260_s0 + $0x8] sm:$0xff]  ;;  %v205_v4 = vmov 32.0  }
   0x6   :  { %v35_v1 = vsel %vm34_vm0, %v32_v0, 0.0  ;;  %v38_v3 = vsel %vm34_vm0, %v33_v2, 0.0  ;;  %146 = vrcp.f32 %v205_v4  ;;  %v98_v7 = vld [vmem:[%s263_s3] sm:$0xff]  ;;  %v206_v8 = vmov 0   ;;  %v99_v11 = vld [vmem:[%s263_s3 + $0x8] sm:$0xff]  ;;  %s123_s30 = sshll.u32 %s264_s4, 4  ;;  %s124_s30 = int_to_ptr.hbm [resolvable:$true] %s123_s30 }
   0x7   :  { %36 = vadd.xlane.f32.xlu0 %v35_v1  ;;  %142 = vset.pattern.permute.xlu2 %v206_v8  ;;  %v144_v38 = vld [vmem:[%s261_s1] ss:$0 sm:$0xff]  ;;  %vm114_vm8 = vcmask 257024   ;;  %s207_s1 = smov [#allocation5]   ;;  %s208_s5 = smov 64  }
   0x8   :  { %143 = vset.pattern.permute.xlu0 %v206_v8  ;;  %102 = vperm.xlu2 %142, %v98_v7   ;;  %v145_v42 = vld [vmem:[#allocation2] ss:$0 sm:$0xff]  ;;  %s121_s27 = sshll.u32 %s207_s1, 4  ;;  %s209_s6 = smov 4   ;;  %s122_s27 = int_to_ptr.vmem [resolvable:$true] %s121_s27 }
   0xc   :  { %v147_v5 = vpop.eup %146 }
   0xd   :  { %v42_v6 = vmul.f32 32.0, %v147_v5  ;;  %vm46_vm1 = vweird.f32 %v147_v5 }
   0xf   :  { %39 = vadd.xlane.f32.xlu0 %v38_v3  ;;  %v43_v9 = vsub.f32 1.0, %v42_v6 }
  0x10   :  { %107 = vperm.xlu2 %142, %v99_v11  }
  0x11   :  { %v44_v10 = vmul.f32 %v147_v5, %v43_v9 }
  0x13   :  { %v45_v12 = vadd.f32 %v147_v5, %v44_v10 }
  0x15   :  { %v47_v13 = vsel %vm46_vm1, %v147_v5, %v45_v12 }
  0x62   :  { %v103_v46 = vpop.permute.xlu2 %102 }
  0x6a   :  { %v108_v55 = vpop.permute.xlu2 %107 }
  0x7a   :  { %v37_v14 = vpop.xlane.xlu0 %36 }
  0x7b   :  { %v48_v15 = vmul.f32 %v47_v13, %v37_v14 }
  0x7d   :  { %v50_v16 = vsub.f32 %v32_v0, %v48_v15 }
  0x7f   :  { %v52_v17 = vmul.f32 %v50_v16, %v50_v16 }
  0x81   :  { %v54_v18 = vsel %vm34_vm0, %v52_v17, 0.0 }
  0x82   :  { %55 = vadd.xlane.f32.xlu1 %v54_v18  ;;  %v40_v19 = vpop.xlane.xlu0 %39 }
  0x83   :  { %v49_v20 = vmul.f32 %v47_v13, %v40_v19 }
  0x85   :  { %v51_v21 = vsub.f32 %v33_v2, %v49_v20 }
  0x87   :  { %v53_v22 = vmul.f32 %v51_v21, %v51_v21 }
  0x89   :  { %v57_v23 = vsel %vm34_vm0, %v53_v22, 0.0 }
  0x8a   :  { %58 = vadd.xlane.f32.xlu1 %v57_v23 }
  0xf5   :  { %v56_v24 = vpop.xlane.xlu1 %55 }
  0xf6   :  { %v60_v25 = vmul.f32 %v56_v24, %v47_v13 }
  0xf8   :  { %v62_v26 = vadd.f32 1e-07, %v60_v25 }
  0xfa   :  { %148 = vrsqrt.f32 %v62_v26  ;;  %vm70_vm3 = vweird.f32 %v62_v26 }
  0xfd   :  { %v59_v27 = vpop.xlane.xlu1 %58 }
  0xfe   :  { %v61_v28 = vmul.f32 %v59_v27, %v47_v13 }
 0x100   :  { %v149_v29 = vpop.eup %148  ;;  %v63_v30 = vadd.f32 1e-07, %v61_v28 }
 0x101   :  { %v65_v31 = vmul.f32 %v149_v29, %v62_v26  ;;  %vm71_vm2 = vweird.f32 %v149_v29 }
 0x102   :  { %150 = vrsqrt.f32 %v63_v30  ;;  %vm72_vm4 = vmor %vm70_vm3, %vm71_vm2  ;;  %vm80_vm6 = vweird.f32 %v63_v30 }
 0x103   :  { %v66_v32 = vmul.f32 %v149_v29, %v65_v31 }
 0x105   :  { %v67_v33 = vmul.f32 0.5, %v66_v32 }
 0x107   :  { %v68_v34 = vsub.f32 1.5, %v67_v33 }
 0x108   :  { %v151_v35 = vpop.eup %150 }
 0x109   :  { %v69_v36 = vmul.f32 %v149_v29, %v68_v34  ;;  %v75_v37 = vmul.f32 %v151_v35, %v63_v30  ;;  %vm81_vm5 = vweird.f32 %v151_v35 }
 0x10a   :  { %vm82_vm7 = vmor %vm80_vm6, %vm81_vm5 }
 0x10b   :  { %v76_v39 = vmul.f32 %v151_v35, %v75_v37  ;;  %v73_v40 = vsel %vm72_vm4, %v149_v29, %v69_v36 }
 0x10c   :  { %v84_v41 = vmul.f32 %v73_v40, %v50_v16 }
 0x10d   :  { %v77_v43 = vmul.f32 0.5, %v76_v39 }
 0x10e   :  { %v90_v44 = vmul.f32 %v144_v38, %v84_v41 }
 0x10f   :  { %v78_v45 = vsub.f32 1.5, %v77_v43 }
 0x110   :  { %v96_v47 = vadd.f32 %v145_v42, %v90_v44 }
 0x111   :  { %v79_v48 = vmul.f32 %v151_v35, %v78_v45 }
 0x112   :  { %v110_v49 = vmul.f32 %v103_v46, %v96_v47 }
 0x113   :  { %v83_v50 = vsel %vm82_vm7, %v151_v35, %v79_v48 }
 0x114   :  { %v112_v51 = vpack.c.bf16 %v110_v49, %v110_v49  ;;  %v85_v52 = vmul.f32 %v83_v50, %v51_v21 }
 0x116   :  { %115 = vst.msk [vmem:[#allocation5] sm:$0xf] %vm114_vm8, %v112_v51  ;;  %v91_v53 = vmul.f32 %v144_v38, %v85_v52 }
 0x118   :  { %v97_v54 = vadd.f32 %v145_v42, %v91_v53 }
 0x11a   :  { %v111_v56 = vmul.f32 %v108_v55, %v97_v54 }
 0x11c   :  { %v113_v57 = vpack.c.bf16 %v111_v56, %v111_v56 }
 0x11e   :  { %116 = vst.msk [vmem:[#allocation5 + $0x4] sm:$0xf] %vm114_vm8, %v113_v57 }
 0x11f   :  { %129 = dma.vmem_to_hbm [thread:$0]  %s122_s27, 128, %s124_s30, [#allocation4], %s208_s5, %s208_s5, %s209_s6  }
 0x120   :  { %202 = dma.done.wait [#allocation4], 128  }
 0x121   :  { %203 = vsyncadd [#allocation4], 4294967168 }
 0x122   :  { %134 = vsyncpa [#allocation3], 1 }
 0x123   :  { %135 = vsyncpa [#allocation4], 1 }

</bundles_post_ra>
